<compile_context>
chip_gen: v7x
topology: tpu7x:2x2x1
jax: 0.10.0
libtpu: 0.0.40
codegen_flags: <defaults>
</compile_context>

<pallas_src>
import functools

import jax
import jax.numpy as jnp
from jax.experimental import pallas as pl
from jax.experimental.pallas import tpu as pltpu


def _focal_loss_kernel(x_ref, t_ref, out_ref, acc_ref, *,
                       gamma, alpha, hw_valid, tile_hw, fold_groups,
                       need_mask, inner_tiles):
    o = pl.program_id(1)
    i = pl.program_id(2)

    @pl.when(i == 0)
    def _():
        acc_ref[...] = jnp.zeros_like(acc_ref)

    t = t_ref[0]                                  # (st, 128) int32 targets
    c = x_ref.shape[0]

    # ---- log-softmax over classes, fully unrolled (2-D VPU work only) ----
    xs = [x_ref[k].astype(jnp.float32) for k in range(c)]   # each (st, 128)
    m = xs[0]
    for k in range(1, c):
        m = jnp.maximum(m, xs[k])
    sum_exp = jnp.exp(xs[0] - m)
    for k in range(1, c):
        sum_exp = sum_exp + jnp.exp(xs[k] - m)
    lse = m + jnp.log(sum_exp)                    # (st, 128)

    # ---- fused per-class gather of logits[target] and alpha[target] ----
    x_t = jnp.zeros_like(m)
    at = None if alpha is None else jnp.zeros_like(m)
    for k in range(c):
        mk = t == k
        x_t = jnp.where(mk, xs[k], x_t)
        if at is not None:
            at = jnp.where(mk, jnp.float32(alpha[k]), at)

    logpt = x_t - lse
    pt = jnp.exp(logpt)

    g = float(gamma)
    if g == 0.0:
        focal = jnp.ones_like(pt)
    elif g == 1.0:
        focal = 1.0 - pt
    elif g == 2.0:
        omp = 1.0 - pt
        focal = omp * omp                          # plain multiply, no pow
    elif g.is_integer():
        focal = jax.lax.integer_pow(1.0 - pt, int(g))
    else:
        focal = (1.0 - pt) ** g

    if at is not None:
        loss = -(focal * at) * logpt              # (st, 128)
    else:
        loss = -focal * logpt

    def _accumulate(v):
        if fold_groups > 1:
            v = v.reshape(fold_groups, 8, 128).sum(axis=0)   # free view + adds
        acc_ref[...] += v

    is_last_inner = i == inner_tiles - 1

    if need_mask:
        # Only the single, final ragged tile pays for the mask (iota+cmp+sel).
        is_ragged = jnp.logical_and(o == pl.num_programs(1) - 1, is_last_inner)

        @pl.when(is_ragged)
        def _():
            sub = jax.lax.broadcasted_iota(jnp.int32, loss.shape, 0)
            lane = jax.lax.broadcasted_iota(jnp.int32, loss.shape, 1)
            tile_idx = o * inner_tiles + i
            pos = tile_idx * tile_hw + sub * 128 + lane
            # select (not multiply) BEFORE accumulating: zeros any NaN/garbage
            # coming from OOB / padded positions.
            _accumulate(jnp.where(pos < hw_valid, loss, 0.0))

        @pl.when(jnp.logical_not(is_ragged))
        def _():
            _accumulate(loss)
    else:
        _accumulate(loss)

    @pl.when(is_last_inner)
    def _():
        out_ref[...] = acc_ref[...]


def focal_loss(logits_nchw, target_nhw, *, gamma=2, alpha=None,
               size_average=True, max_tile_bytes=8 << 20):
    """Pallas implementation of FocalLoss.forward.

    logits_nchw: (N, C, H, W) float logits (f32 or bf16 — kept narrow in HBM)
    target_nhw : (N, H, W) int class indices in [0, C)
    """
    n, c, h, w = logits_nchw.shape
    hw = h * w
    x_itemsize = jnp.dtype(logits_nchw.dtype).itemsize

    # ---- alpha handling (mirrors FocalLoss.__init__), baked as constants ----
    if alpha is None:
        alpha_const = None
    elif isinstance(alpha, (float, int)):
        alpha_const = (float(alpha), 1.0 - float(alpha))
    else:
        alpha_const = tuple(float(a) for a in alpha)
    if alpha_const is not None:
        assert len(alpha_const) == c, "alpha length must match num classes"

    # ---- spatial rows of 128 lanes -----------------------------------------
    rows = pl.cdiv(hw, 128)
    hw128 = rows * 128

    # ---- tile sizing: st rows per tile --------------------------------------
    # Cap by (a) max_tile_bytes of logits per buffer and (b) a ~24 MiB
    # double-buffered working set so the derived vmem_limit always fits v7x's
    # 64 MiB physical VMEM (and v5e/v6e's 128 MiB trivially).
    row_bytes = 128 * (c * x_itemsize + 4)          # logits row + target row
    st_cap = min(max_tile_bytes // (c * 128 * x_itemsize),
                 (24 << 20) // (2 * row_bytes))
    st_cap = max(8, (st_cap // 8) * 8)
    if rows <= st_cap:
        st = rows                                    # single tile; may be <8
        n_tiles = 1
    else:
        st = st_cap                                  # multiple of 8
        n_tiles = pl.cdiv(rows, st)
    tile_hw = st * 128

    # Split spatial tiles into (outer parallel, inner reduce) so both v7x
    # TensorCores get work even when N (or N*outer) is small/odd.
    outer = 2 if (n_tiles % 2 == 0 and n_tiles >= 2) else 1
    inner = n_tiles // outer

    need_mask = (n_tiles * tile_hw) != hw

    # ---- lane-dense views of NCHW input (no transpose, no full-tile pad) ----
    x = logits_nchw.reshape(n, c, hw)
    t = target_nhw.reshape(n, 1, hw).astype(jnp.int32)
    if hw128 != hw:
        # Only a <128-element lane-alignment pad; non-divisible final blocks
        # are read OOB and masked in-kernel instead of padding to tile size.
        # TODO(synk): a fully pad-free ragged path needs an in-kernel
        # (c, tile_hw)->(c, st, 128) relayout; kept the small lane pad instead.
        x = jnp.pad(x, ((0, 0), (0, 0), (0, hw128 - hw)))
        t = jnp.pad(t, ((0, 0), (0, 0), (0, hw128 - hw)))
    x = x.reshape(n, c, rows, 128)
    t = t.reshape(n, 1, rows, 128)

    fold_groups = st // 8 if st % 8 == 0 else 1
    acc_rows = 8 if st % 8 == 0 else st

    kernel = functools.partial(
        _focal_loss_kernel, gamma=float(gamma), alpha=alpha_const,
        hw_valid=hw, tile_hw=tile_hw, fold_groups=fold_groups,
        need_mask=need_mask, inner_tiles=inner)

    # VMEM budget derived from the actual double-buffered working set.
    need_bytes = (2 * c * tile_hw * x_itemsize      # logits (double-buffered)
                  + 2 * tile_hw * 4                 # targets (double-buffered)
                  + acc_rows * 128 * 4              # accumulator scratch
                  + 2 * acc_rows * 128 * 4)         # output block
    vmem_limit = int(min(56 << 20, max(24 << 20, int(1.5 * need_bytes))))

    partials = pl.pallas_call(
        kernel,
        out_shape=jax.ShapeDtypeStruct((n, outer, acc_rows, 128), jnp.float32),
        grid_spec=pltpu.PrefetchScalarGridSpec(
            num_scalar_prefetch=0,
            grid=(n, outer, inner),
            in_specs=[
                pl.BlockSpec((None, c, st, 128),
                             lambda b, o, i: (b, 0, o * inner + i, 0)),
                pl.BlockSpec((None, 1, st, 128),
                             lambda b, o, i: (b, 0, o * inner + i, 0)),
            ],
            out_specs=pl.BlockSpec((None, None, acc_rows, 128),
                                   lambda b, o, i: (b, o, 0, 0)),
            scratch_shapes=[pltpu.VMEM((acc_rows, 128), jnp.float32)],
        ),
        compiler_params=pltpu.CompilerParams(
            dimension_semantics=("parallel", "parallel", "arbitrary"),
            vmem_limit_bytes=vmem_limit),
    )(x, t)

    total = jnp.sum(partials)                        # tiny; wrapper-side reduce
    if size_average:
        total = total / jnp.float32(n * hw)
    return total


def _focal_loss_ref(logits_nchw, target_nhw, gamma, alpha_vec, size_average):
    n, c, h, w = logits_nchw.shape
    x = jnp.transpose(logits_nchw, (0, 2, 3, 1)).reshape(-1, c)
    t = target_nhw.reshape(-1).astype(jnp.int32)
    logp = jax.nn.log_softmax(x, axis=1)
    logpt = jnp.take_along_axis(logp, t[:, None], axis=1)[:, 0]
    pt = jnp.exp(logpt)
    if alpha_vec is not None:
        logpt = logpt * alpha_vec[t]
    loss = -((1.0 - pt) ** gamma) * logpt
    return loss.mean() if size_average else loss.sum()


if __name__ == "__main__":
    key = jax.random.PRNGKey(0)
    ks = jax.random.split(key, 10)

    gamma = 2
    alpha = [0.25, 0.25, 0.25, 0.25]
    alpha_arr = jnp.asarray(alpha, jnp.float32)

    # 1) Main case: (N, C, H, W) = (2, 4, 16, 16), f32, mean reduction.
    N, C, H, W = 2, 4, 16, 16
    logits = jax.random.normal(ks[0], (N, C, H, W), dtype=jnp.float32)
    target = jax.random.randint(ks[1], (N, H, W), 0, C, dtype=jnp.int32)
    out = jax.block_until_ready(
        focal_loss(logits, target, gamma=gamma, alpha=alpha, size_average=True))
    ref = _focal_loss_ref(logits, target, gamma, alpha_arr, True)
    assert jnp.allclose(out, ref, rtol=1e-4, atol=1e-4), (out, ref)

    # 2) bf16 logits (narrow HBM traffic), alpha=None, sum reduction.
    logits_bf = logits.astype(jnp.bfloat16)
    out_bf = jax.block_until_ready(
        focal_loss(logits_bf, target, gamma=gamma, alpha=None,
                   size_average=False))
    ref_bf = _focal_loss_ref(logits_bf.astype(jnp.float32), target, gamma,
                             None, False)
    assert jnp.allclose(out_bf, ref_bf, rtol=1e-4, atol=1e-4), (out_bf, ref_bf)

    # 3) Multi-tile + non-divisible final block (no jnp.pad; OOB rows masked):
    #    H*W = 2560 -> 20 lane-rows, forced st=8 -> 3 tiles, last overruns.
    logits3 = jax.random.normal(ks[2], (1, C, 40, 64), dtype=jnp.float32)
    target3 = jax.random.randint(ks[3], (1, 40, 64), 0, C, dtype=jnp.int32)
    out3 = jax.block_until_ready(
        focal_loss(logits3, target3, gamma=gamma, alpha=alpha,
                   size_average=True, max_tile_bytes=16 * 1024))
    ref3 = _focal_loss_ref(logits3, target3, gamma, alpha_arr, True)
    assert jnp.allclose(out3, ref3, rtol=1e-4, atol=1e-4), (out3, ref3)

    # 4) Multi-tile with outer parallel split (4 tiles -> outer=2, inner=2).
    logits4 = jax.random.normal(ks[4], (1, C, 64, 64), dtype=jnp.float32)
    target4 = jax.random.randint(ks[5], (1, 64, 64), 0, C, dtype=jnp.int32)
    out4 = jax.block_until_ready(
        focal_loss(logits4, target4, gamma=gamma, alpha=alpha,
                   size_average=False, max_tile_bytes=16 * 1024))
    ref4 = _focal_loss_ref(logits4, target4, gamma, alpha_arr, False)
    assert jnp.allclose(out4, ref4, rtol=1e-4, atol=1e-4), (out4, ref4)

    # 5) Ragged spatial size (H*W % 128 != 0), sum reduction (lane-pad path).
    logits5 = jax.random.normal(ks[6], (N, C, 5, 5), dtype=jnp.float32)
    target5 = jax.random.randint(ks[7], (N, 5, 5), 0, C, dtype=jnp.int32)
    out5 = jax.block_until_ready(
        focal_loss(logits5, target5, gamma=gamma, alpha=alpha,
                   size_average=False))
    ref5 = _focal_loss_ref(logits5, target5, gamma, alpha_arr, False)
    assert jnp.allclose(out5, ref5, rtol=1e-4, atol=1e-4), (out5, ref5)

    print("KERNEL_OK")
</pallas_src>

<mosaic_0001>
module attributes {stable_mosaic.version = 11 : i64} {
  func.func @_focal_loss_kernel(%arg0: i32, %arg1: i32, %arg2: i32, %arg3: memref<1x4x2x128xf32, #tpu.memory_space<vmem>>, %arg4: memref<1x1x2x128xi32, #tpu.memory_space<vmem>>, %arg5: memref<1x1x2x128xf32, #tpu.memory_space<vmem>>, %arg6: memref<2x128xf32, #tpu.memory_space<vmem>>) attributes {dimension_semantics = [#tpu.dimension_semantics<parallel>, #tpu.dimension_semantics<parallel>, #tpu.dimension_semantics<arbitrary>], iteration_bounds = array<i64: 2, 1, 1>, scalar_prefetch = 0 : i64, scratch_operands = 1 : i64, tpu.core_type = #tpu.core_type<tc>, window_params = [{transform_indices = @transform_0, window_bounds = array<i64: 1, 4, 2, 128>}, {transform_indices = @transform_1, window_bounds = array<i64: 1, 1, 2, 128>}, {transform_indices = @transform_2, window_bounds = array<i64: 1, 1, 2, 128>}]} {
    %c0_i32 = arith.constant 0 : i32
    %0 = arith.cmpi eq, %arg2, %c0_i32 : i32
    %1 = arith.extui %0 : i1 to i32
    %c0_i32_0 = arith.constant 0 : i32
    %2 = arith.cmpi ne, %1, %c0_i32_0 : i32
    scf.if %2 {
      %cst_31 = arith.constant 0.000000e+00 : f32
      %66 = vector.broadcast %cst_31 : f32 to vector<2x128xf32>
      %c0_32 = arith.constant 0 : index
      %c0_33 = arith.constant 0 : index
      %67 = vector.load %arg6[%c0_32, %c0_33] : memref<2x128xf32, #tpu.memory_space<vmem>>, vector<2x128xf32>
      tpu.vector_store %arg6[%c0_32, %c0_33], %66 {strides = array<i32>} : memref<2x128xf32, #tpu.memory_space<vmem>>, vector<2x128xf32>,
    } else {
    }
    %c0 = arith.constant 0 : index
    %c0_1 = arith.constant 0 : index
    %c0_2 = arith.constant 0 : index
    %c0_3 = arith.constant 0 : index
    %3 = vector.load %arg4[%c0, %c0_1, %c0_2, %c0_3] : memref<1x1x2x128xi32, #tpu.memory_space<vmem>>, vector<1x1x2x128xi32>
    %4 = vector.shape_cast %3 : vector<1x1x2x128xi32> to vector<2x128xi32>
    %c0_4 = arith.constant 0 : index
    %c0_5 = arith.constant 0 : index
    %c0_6 = arith.constant 0 : index
    %c0_7 = arith.constant 0 : index
    %5 = vector.load %arg3[%c0_4, %c0_5, %c0_6, %c0_7] : memref<1x4x2x128xf32, #tpu.memory_space<vmem>>, vector<1x1x2x128xf32>
    %6 = vector.shape_cast %5 : vector<1x1x2x128xf32> to vector<2x128xf32>
    %c0_8 = arith.constant 0 : index
    %c1 = arith.constant 1 : index
    %c0_9 = arith.constant 0 : index
    %c0_10 = arith.constant 0 : index
    %7 = vector.load %arg3[%c0_8, %c1, %c0_9, %c0_10] : memref<1x4x2x128xf32, #tpu.memory_space<vmem>>, vector<1x1x2x128xf32>
    %8 = vector.shape_cast %7 : vector<1x1x2x128xf32> to vector<2x128xf32>
    %c0_11 = arith.constant 0 : index
    %c2 = arith.constant 2 : index
    %c0_12 = arith.constant 0 : index
    %c0_13 = arith.constant 0 : index
    %9 = vector.load %arg3[%c0_11, %c2, %c0_12, %c0_13] : memref<1x4x2x128xf32, #tpu.memory_space<vmem>>, vector<1x1x2x128xf32>
    %10 = vector.shape_cast %9 : vector<1x1x2x128xf32> to vector<2x128xf32>
    %c0_14 = arith.constant 0 : index
    %c3 = arith.constant 3 : index
    %c0_15 = arith.constant 0 : index
    %c0_16 = arith.constant 0 : index
    %11 = vector.load %arg3[%c0_14, %c3, %c0_15, %c0_16] : memref<1x4x2x128xf32, #tpu.memory_space<vmem>>, vector<1x1x2x128xf32>
    %12 = vector.shape_cast %11 : vector<1x1x2x128xf32> to vector<2x128xf32>
    %13 = arith.maximumf %6, %8 : vector<2x128xf32>
    %14 = arith.maximumf %13, %10 : vector<2x128xf32>
    %15 = arith.maximumf %14, %12 : vector<2x128xf32>
    %16 = arith.subf %6, %15 : vector<2x128xf32>
    %17 = math.exp %16 : vector<2x128xf32>
    %18 = arith.subf %8, %15 : vector<2x128xf32>
    %19 = math.exp %18 : vector<2x128xf32>
    %20 = arith.addf %17, %19 : vector<2x128xf32>
    %21 = arith.subf %10, %15 : vector<2x128xf32>
    %22 = math.exp %21 : vector<2x128xf32>
    %23 = arith.addf %20, %22 : vector<2x128xf32>
    %24 = arith.subf %12, %15 : vector<2x128xf32>
    %25 = math.exp %24 : vector<2x128xf32>
    %26 = arith.addf %23, %25 : vector<2x128xf32>
    %27 = math.log %26 : vector<2x128xf32>
    %28 = arith.addf %15, %27 : vector<2x128xf32>
    %cst = arith.constant 0.000000e+00 : f32
    %29 = vector.broadcast %cst : f32 to vector<2x128xf32>
    %cst_17 = arith.constant 0.000000e+00 : f32
    %30 = vector.broadcast %cst_17 : f32 to vector<2x128xf32>
    %c0_i32_18 = arith.constant 0 : i32
    %31 = vector.broadcast %c0_i32_18 : i32 to vector<2x128xi32>
    %32 = arith.cmpi eq, %4, %31 : vector<2x128xi32>
    %33 = arith.select %32, %6, %29 : vector<2x128xi1>, vector<2x128xf32>
    %cst_19 = arith.constant 2.500000e-01 : f32
    %34 = vector.broadcast %cst_19 : f32 to vector<2x128xf32>
    %35 = arith.select %32, %34, %30 : vector<2x128xi1>, vector<2x128xf32>
    %c1_i32 = arith.constant 1 : i32
    %36 = vector.broadcast %c1_i32 : i32 to vector<2x128xi32>
    %37 = arith.cmpi eq, %4, %36 : vector<2x128xi32>
    %38 = arith.select %37, %8, %33 : vector<2x128xi1>, vector<2x128xf32>
    %cst_20 = arith.constant 2.500000e-01 : f32
    %39 = vector.broadcast %cst_20 : f32 to vector<2x128xf32>
    %40 = arith.select %37, %39, %35 : vector<2x128xi1>, vector<2x128xf32>
    %c2_i32 = arith.constant 2 : i32
    %41 = vector.broadcast %c2_i32 : i32 to vector<2x128xi32>
    %42 = arith.cmpi eq, %4, %41 : vector<2x128xi32>
    %43 = arith.select %42, %10, %38 : vector<2x128xi1>, vector<2x128xf32>
    %cst_21 = arith.constant 2.500000e-01 : f32
    %44 = vector.broadcast %cst_21 : f32 to vector<2x128xf32>
    %45 = arith.select %42, %44, %40 : vector<2x128xi1>, vector<2x128xf32>
    %c3_i32 = arith.constant 3 : i32
    %46 = vector.broadcast %c3_i32 : i32 to vector<2x128xi32>
    %47 = arith.cmpi eq, %4, %46 : vector<2x128xi32>
    %48 = arith.select %47, %12, %43 : vector<2x128xi1>, vector<2x128xf32>
    %cst_22 = arith.constant 2.500000e-01 : f32
    %49 = vector.broadcast %cst_22 : f32 to vector<2x128xf32>
    %50 = arith.select %47, %49, %45 : vector<2x128xi1>, vector<2x128xf32>
    %51 = arith.subf %48, %28 : vector<2x128xf32>
    %52 = math.exp %51 : vector<2x128xf32>
    %cst_23 = arith.constant 1.000000e+00 : f32
    %53 = vector.broadcast %cst_23 : f32 to vector<2x128xf32>
    %54 = arith.subf %53, %52 : vector<2x128xf32>
    %55 = arith.mulf %54, %54 : vector<2x128xf32>
    %56 = arith.mulf %55, %50 : vector<2x128xf32>
    %cst_24 = arith.constant 0.000000e+00 : f32
    %57 = vector.broadcast %cst_24 : f32 to vector<2x128xf32>
    %58 = arith.subf %57, %56 : vector<2x128xf32>
    %59 = arith.mulf %58, %51 : vector<2x128xf32>
    %c0_i32_25 = arith.constant 0 : i32
    %60 = arith.cmpi eq, %arg2, %c0_i32_25 : i32
    %c0_26 = arith.constant 0 : index
    %c0_27 = arith.constant 0 : index
    %61 = vector.load %arg6[%c0_26, %c0_27] : memref<2x128xf32, #tpu.memory_space<vmem>>, vector<2x128xf32>
    %62 = arith.addf %61, %59 : vector<2x128xf32>
    %c0_28 = arith.constant 0 : index
    %c0_29 = arith.constant 0 : index
    %63 = vector.load %arg6[%c0_28, %c0_29] : memref<2x128xf32, #tpu.memory_space<vmem>>, vector<2x128xf32>
    tpu.vector_store %arg6[%c0_28, %c0_29], %62 {strides = array<i32>} : memref<2x128xf32, #tpu.memory_space<vmem>>, vector<2x128xf32>,
    %64 = arith.extui %60 : i1 to i32
    %c0_i32_30 = arith.constant 0 : i32
    %65 = arith.cmpi ne, %64, %c0_i32_30 : i32
    scf.if %65 {
      %c0_31 = arith.constant 0 : index
      %c0_32 = arith.constant 0 : index
      %66 = vector.load %arg6[%c0_31, %c0_32] : memref<2x128xf32, #tpu.memory_space<vmem>>, vector<2x128xf32>
      %c0_33 = arith.constant 0 : index
      %c0_34 = arith.constant 0 : index
      %c0_35 = arith.constant 0 : index
      %c0_36 = arith.constant 0 : index
      %67 = vector.load %arg5[%c0_33, %c0_34, %c0_35, %c0_36] : memref<1x1x2x128xf32, #tpu.memory_space<vmem>>, vector<1x1x2x128xf32>
      %68 = vector.shape_cast %67 : vector<1x1x2x128xf32> to vector<2x128xf32>
      %69 = vector.shape_cast %66 : vector<2x128xf32> to vector<1x1x2x128xf32>
      tpu.vector_store %arg5[%c0_33, %c0_34, %c0_35, %c0_36], %69 {strides = array<i32>} : memref<1x1x2x128xf32, #tpu.memory_space<vmem>>, vector<1x1x2x128xf32>,
    } else {
    }
    return
  }
  func.func @transform_0(%arg0: i32, %arg1: i32, %arg2: i32) -> (i32, i32, i32, i32) {
    %c1_i32 = arith.constant 1 : i32
    %0 = arith.muli %arg1, %c1_i32 : i32
    %1 = arith.addi %0, %arg2 : i32
    %c0_i32 = arith.constant 0 : i32
    %c0_i32_0 = arith.constant 0 : i32
    %c0_i32_1 = arith.constant 0 : i32
    return %arg0, %c0_i32, %1, %c0_i32_0 : i32, i32, i32, i32
  }
  func.func @transform_1(%arg0: i32, %arg1: i32, %arg2: i32) -> (i32, i32, i32, i32) {
    %c1_i32 = arith.constant 1 : i32
    %0 = arith.muli %arg1, %c1_i32 : i32
    %1 = arith.addi %0, %arg2 : i32
    %c0_i32 = arith.constant 0 : i32
    %c0_i32_0 = arith.constant 0 : i32
    %c0_i32_1 = arith.constant 0 : i32
    return %arg0, %c0_i32, %1, %c0_i32_0 : i32, i32, i32, i32
  }
  func.func @transform_2(%arg0: i32, %arg1: i32, %arg2: i32) -> (i32, i32, i32, i32) {
    %c0_i32 = arith.constant 0 : i32
    %c0_i32_0 = arith.constant 0 : i32
    %c0_i32_1 = arith.constant 0 : i32
    return %arg0, %arg1, %c0_i32, %c0_i32_0 : i32, i32, i32, i32
  }
}

</mosaic_0001>

<bundles_post_ra>
// kernel: tpu_custom_call.1
= control target key start
LH: loop header
LB: loop body
LE: loop exit
PB: predicated region body
PF: predicated region fallthrough
CT: control target
= control target key end

     0   :  { %7 = vsyncpa [#allocation4], 0  ;;  %s912_s0 = inlined_call_operand.hbm [shape: f32[2,4,2,128], index: 0, kind: input, shape index: {}]   ;;  %s913_s1 = inlined_call_operand.hbm [shape: s32[2,1,2,128], index: 1, kind: input, shape index: {}]   ;;  %s914_s2 = inlined_call_operand.hbm [shape: f32[2,1,2,128], index: 2, kind: output, shape index: {}]  }
   0x1   :  { %9 = vsyncpa [#allocation4 + $0x1], 0 }
   0x2   :  { %10 = vsyncpa [#allocation7], 0 }
   0x3   :  { %12 = vsyncpa [#allocation7 + $0x1], 0 }
   0x4   :  { %13 = vsyncpa [#allocation5], 0 }
   0x5   :  { %15 = vsyncpa [#allocation5 + $0x1], 0  ;;  %s693_s9 = smov 0   ;;  %s695_s10 = smov 0  }
   0x6   :  { %s697_s11 = smov 0   ;;  %s699_s12 = smov 0  }
   0x7   :  { %s701_s13 = smov 0   ;;  %s703_s14 = smov 0  }
   0x8 LB: > { %s421_s15 = sadd.s32 4294967295, %s670_s14   ;;  %s422_s16 = sadd.s32 4294967294, %s670_s14   ;;  %s670_s14 = sphi %s703_s14, %s21_s14   ;;  %s666_s13 = sphi %s701_s13, %s933_s13   ;;  %s662_s12 = sphi %s699_s12, %s932_s12   ;;  %s658_s11 = sphi %s697_s11, %s931_s11   ;;  %s654_s10 = sphi %s695_s10, %s930_s10   ;;  %s650_s9 = sphi %s693_s9, %s929_s9  }
   0x9   : > { %s40_s17 = sadd.s32 1, %s666_s13  ;;  %s51_s18 = sadd.s32 1, %s658_s11 }
   0xa   : > { %p42_p0 = scmp.ge.s32.totalorder %s40_s17, 2  ;;  %p58_p1 = scmp.ne.s32.totalorder %s658_s11, %s654_s10 }
   0xb   : > { %p59_p2 = scmp.eq.s32.totalorder %s670_s14, 0  ;;  %p64_p3 = scmp.ne.s32.totalorder %s654_s10, %s650_s9 }
   0xc   : > { %s935_s17 = smov (%p42_p0, %s40_s17), 0  ;;  %p65_p5 = scmp.eq.s32.totalorder %s421_s15, 0 }
   0xd   : > { %p734_p4 = por %p59_p2, %p58_p1  ;;  %s46_s20 = ssub.s32 %s666_s13, %s935_s17 }
   0xe   : > { %p120_p6 = scmp.eq.s32.totalorder %s421_s15, 1  ;;  %p49_p7 = scmp.eq.s32.totalorder %s46_s20, 0 }
   0xf   : > { %p740_p8 = por %p65_p5, %p64_p3  ;;  %p126_p10 = scmp.eq.s32.totalorder %s422_s16, 1 }
  0x10   : > { %p744_p9 = por %p120_p6, %p58_p1  ;;  %p459_p13 = scmp.lt.s32.totalorder %s670_s14, 2 }
  0x11   : > { %s918_s21 = scalar_select %p740_p8, 1, 0 }
  0x12   : > { %s919_s22 = scalar_select %p744_p9, 1, 0 }
  0x13   : > { %s749_s23 = scalar_select %p49_p7, %s658_s11, %s51_s18  }
  0x14   : > { %p751_p11 = por %p126_p10, %p64_p3  ;;  %s758_s25 = sand.u32 1, %s658_s11  }
  0x15   : > { %s425_s26 = sshll.u32 %s758_s25, 3  ;;  %s441_s27 = sshll.u32 %s666_s13, 7 }
  0x16   : > { %s920_s24 = scalar_select %p751_p11, 1, 0 }
  0x17   : > { %s765_s30 = scalar_lea.hbm %s912_s0, %s441_s27  ;;  %s150_s3 = scalar_lea.vmem [#allocation3], %s425_s26 }
  0x18   : > { %s159_s4 = sshll.u32 %s150_s3, 4  ;;  %p771_p0 = pnand %p459_p13, %p734_p4  ;;  %s767_s4 = int_to_ptr.vmem [resolvable:$true] %s159_s4 }
  0x19   : > { %s147_s6 = scalar_lea.sflag [#allocation4], %s758_s25  ;;  %s524_s7 = scalar_lea.hbm %s765_s30, 128 }
  0x1a   : > { %p525_p2 = scmp.ne.s32.totalorder %s765_s30, %s524_s7  ;;  %p526_p3 = pneg %p771_p0 }
  0x1b   : > { %s529_s16 = scalar_lea.hbm %s912_s0, 256  ;;  %p530_p4 = scmp.lt.u32.totalorder %s765_s30, %s912_s0 }
  0x1c   : > { %p527_p5 = pnand %p526_p3, %p525_p2  ;;  %p531_p7 = scmp.lt.u32.totalorder %s529_s16, %s524_s7 }
  0x1d   : > { %p533_p13 = scmp.lt.u32.totalorder %s524_s7, %s765_s30 }
  0x1e   : > { %p528_p6 = pneg %p527_p5  ;;  %p532_p10 = por %p531_p7, %p530_p4 }
  0x20   : > { %p534_p12 = por %p533_p13, %p532_p10 }
  0x22   : > { %p535_p1 = pnand %p534_p12, %p528_p6 }
  0x24   : > { %538 = shalt.err (!%p535_p1)
}
  0x25   : > { %s539_s20 = scalar_lea.vmem %s767_s4, 128  ;;  %s672_s26 = smov [#allocation3]  }
  0x26   : > { %p540_p2 = scmp.ne.s32.totalorder %s767_s4, %s539_s20  ;;  %s544_s27 = sshll.u32 %s672_s26, 4  ;;  %s545_s27 = int_to_ptr.vmem [resolvable:$false] %s544_s27 }
  0x27   : > { %s546_s28 = scalar_lea.vmem %s545_s27, 256  ;;  %p547_p9 = scmp.lt.s32.totalorder %s767_s4, %s545_s27 }
  0x28   : > { %p542_p5 = pnand %p540_p2, %p526_p3  ;;  %p548_p4 = scmp.lt.s32.totalorder %s546_s28, %s539_s20 }
  0x2a   : > { %p543_p11 = pneg %p542_p5  ;;  %p549_p7 = por %p548_p4, %p547_p9 }
  0x2c   : > { %p550_p10 = pnand %p549_p7, %p543_p11 }
  0x2e   : > { %553 = shalt.err (!%p550_p10)
}
  0x2f   : > { %s673_s29 = smov 32   ;;  %s674_s3 = smov 2  }
  0x30   : > { %451 = dma.hbm_to_vmem [thread:$0]  (!%p771_p0), %s765_s30, 128, %s767_s4, %s147_s6, %s673_s29, %s673_s29, %s674_s3  }
  0x31   : > { %p187_p12 = scmp.lt.s32.totalorder %s670_s14, 3  ;;  %s428_s7 = sshll.u32 %s758_s25, 1 }
  0x32   : > { %s429_s8 = sshll.u32 %s666_s13, 5  ;;  %p922_p9 = scmp.ge.s32.totalorder %s670_s14, 1 }
  0x33   : > { %s816_s19 = scalar_lea.hbm %s913_s1, %s429_s8  ;;  %s173_s20 = scalar_lea.vmem [#allocation6], %s428_s7 }
  0x34   : > { %p809_p11 = pnand %p922_p9, %p187_p12  ;;  %s182_s26 = sshll.u32 %s173_s20, 4  ;;  %s183_s26 = int_to_ptr.vmem [resolvable:$true] %s182_s26 }
  0x35   : > { %s170_s30 = scalar_lea.sflag [#allocation7], %s758_s25  ;;  %s554_s4 = scalar_lea.hbm %s816_s19, 32 }
  0x36   : > { %s923_s15 = scalar_select %p809_p11, 1, 0 }
  0x37   : > { %p555_p1 = scmp.ne.s32.totalorder %s816_s19, %s554_s4  ;;  %s559_s28 = scalar_lea.hbm %s913_s1, 64 }
  0x38   : > { %p560_p2 = scmp.lt.u32.totalorder %s816_s19, %s913_s1  ;;  %p561_p5 = scmp.lt.u32.totalorder %s559_s28, %s554_s4 }
  0x39   : > { %p557_p6 = pnand %p555_p1, %p526_p3  ;;  %p563_p7 = scmp.lt.u32.totalorder %s554_s4, %s816_s19 }
  0x3a   : > { %p562_p4 = por %p561_p5, %p560_p2 }
  0x3b   : > { %p558_p13 = pneg %p557_p6 }
  0x3c   : > { %p564_p10 = por %p563_p7, %p562_p4 }
  0x3e   : > { %p565_p12 = pnand %p564_p10, %p558_p13 }
  0x40   : > { %568 = shalt.err (!%p565_p12)
}
  0x41   : > { %s569_s25 = scalar_lea.vmem %s183_s26, 32  ;;  %s675_s7 = smov [#allocation6]  }
  0x42   : > { %p570_p9 = scmp.ne.s32.totalorder %s183_s26, %s569_s25  ;;  %s574_s8 = sshll.u32 %s675_s7, 4  ;;  %s575_s8 = int_to_ptr.vmem [resolvable:$false] %s574_s8 }
  0x43   : > { %s576_s16 = scalar_lea.vmem %s575_s8, 64  ;;  %p577_p8 = scmp.lt.s32.totalorder %s183_s26, %s575_s8 }
  0x44   : > { %p572_p1 = pnand %p570_p9, %p526_p3  ;;  %p578_p11 = scmp.lt.s32.totalorder %s576_s16, %s569_s25 }
  0x46   : > { %p573_p6 = pneg %p572_p1  ;;  %p579_p2 = por %p578_p11, %p577_p8 }
  0x48   : > { %p580_p5 = pnand %p579_p2, %p573_p6 }
  0x4a   : > { %583 = shalt.err (!%p580_p5)
}
  0x4b   : > { %454 = dma.hbm_to_vmem [thread:$0]  (!%p771_p0), %s816_s19, 32, %s183_s26, %s170_s30  }
  0x4c   : > { %p924_p13 = scmp.ne.s32.totalorder %s923_s15, 0 }
  0x4d   : > { %s841_s18 = sand.u32 (!%p924_p13), 1, %s654_s10   ;;  %p925_p3 = scmp.ne.s32.totalorder (!%p924_p13), %s918_s21, 0 }
  0x4e   : > { %191 = sbr.rel (%p924_p13) target bundleno = 182 (0xb6), region = 28  ;;  %s431_s20 = sshll.u32 (!%p924_p13), %s841_s18, 3 }
  0x4f   : > { %s194_s4 = scalar_lea.sflag (!%p924_p13), [#allocation4], %s841_s18  ;;  %s197_s6 = scalar_lea.vmem (!%p924_p13), [#allocation3], %s431_s20 }
  0x55   : > { %637 = dma.done.wait (%p925_p3), %s194_s4, 128  }
  0x56   : > { %639 = vsyncadd (%p925_p3), %s194_s4, 4294967168  ;;  %s432_s5 = sshll.u32 %s841_s18, 1  ;;  %s203_s15 = scalar_lea.sflag [#allocation7], %s841_s18 }
  0x57   : > { %s206_s19 = scalar_lea.vmem [#allocation6], %s432_s5 }
  0x58   : > { %641 = dma.done.wait (%p925_p3), %s203_s15, 32  }
  0x59   : > { %643 = vsyncadd (%p925_p3), %s203_s15, 4294967264  ;;  %v676_v0 = vmov 0.0   ;;  %v240_v1 = vld [vmem:[%s197_s6] sm:$0x3]  ;;  %v434_v2 = vld [vmem:[%s197_s6 + $0x2] sm:$0x3] }
  0x5a   : > { %238 = vst [vmem:[#allocation2] sm:$0x3] %v676_v0  ;;  %v435_v3 = vld [vmem:[%s197_s6 + $0x4] sm:$0x3]  ;;  %v247_v4 = vmax.f32 %v240_v1, %v434_v2  ;;  %v436_v5 = vld [vmem:[%s197_s6 + $0x6] sm:$0x3] }
  0x5b   : > { %v239_v22 = vld [vmem:[%s206_s19] sm:$0x3]  ;;  %s231_s21 = scalar_lea.vmem [#allocation8], %s432_s5  ;;  %s438_s30 = sshll.u32 %s662_s12, 5 }
  0x5c   : > { %v248_v6 = vmax.f32 %v247_v4, %v435_v3  ;;  %vm268_vm0 = vcmp.eq.s32.totalorder %v239_v22, 0  ;;  %vm271_vm1 = vcmp.eq.s32.totalorder %v239_v22, 1  ;;  %vm274_vm2 = vcmp.eq.s32.totalorder %v239_v22, 2  ;;  %s311_s26 = sshll.u32 %s231_s21, 4  ;;  %s865_s29 = scalar_lea.hbm %s914_s2, %s438_s30  ;;  %s860_s26 = int_to_ptr.vmem [resolvable:$true] %s311_s26 }
  0x5d   : > { %v269_v24 = vsel %vm268_vm0, %v240_v1, 0.0  ;;  %vm277_vm3 = vcmp.eq.s32.totalorder %v239_v22, 3  ;;  %v270_v33 = vsel %vm268_vm0, 0.25, %v676_v0  ;;  %s297_s3 = scalar_lea.sflag [#allocation5], %s841_s18  ;;  %s584_s25 = scalar_lea.vmem %s860_s26, 32 }
  0x5e   : > { %v249_v7 = vmax.f32 %v248_v6, %v436_v5  ;;  %v272_v25 = vsel %vm271_vm1, %v434_v2, %v269_v24  ;;  %v273_v34 = vsel %vm271_vm1, 0.25, %v270_v33  ;;  %p585_p8 = scmp.ne.s32.totalorder %s860_s26, %s584_s25  ;;  %p926_p0 = scmp.ne.s32.totalorder %s919_s22, 0 }
  0x5f   : > { %v275_v26 = vsel %vm274_vm2, %v435_v3, %v272_v25  ;;  %v276_v35 = vsel %vm274_vm2, 0.25, %v273_v34  ;;  %s677_s7 = smov [#allocation8]  }
  0x60   : > { %v250_v8 = vsub.f32 %v240_v1, %v249_v7  ;;  %v253_v9 = vsub.f32 %v434_v2, %v249_v7  ;;  %v257_v10 = vsub.f32 %v435_v3, %v249_v7  ;;  %v261_v11 = vsub.f32 %v436_v5, %v249_v7  ;;  %p586_p11 = pnand %p585_p8, %p926_p0  ;;  %s588_s12 = sshll.u32 %s677_s7, 4  ;;  %s589_s12 = int_to_ptr.vmem [resolvable:$false] %s588_s12 }
  0x61   : > { %v278_v29 = vsel %vm277_vm3, %v436_v5, %v275_v26  ;;  %v279_v38 = vsel %vm277_vm3, 0.25, %v276_v35  ;;  %v288_v42 = vld [vmem:[#allocation2] sm:$0x3]  ;;  %s590_s8 = scalar_lea.vmem %s589_s12, 64  ;;  %p591_p7 = scmp.lt.s32.totalorder %s860_s26, %s589_s12 }
  0x62   : > { %v251_v12 = vmul.f32 1.442695, %v250_v8  ;;  %v254_v13 = vmul.f32 1.442695, %v253_v9  ;;  %v258_v14 = vmul.f32 1.442695, %v257_v10  ;;  %p587_p4 = pneg %p586_p11  ;;  %p592_p10 = scmp.lt.s32.totalorder %s590_s8, %s584_s25 }
  0x63   : > { %v262_v15 = vmul.f32 1.442695, %v261_v11 }
  0x64   : > { %512 = vpow2.f32 %v251_v12  ;;  %p593_p12 = por %p592_p10, %p591_p7 }
  0x65   : > { %514 = vpow2.f32 %v254_v13 }
  0x66   : > { %516 = vpow2.f32 %v258_v14  ;;  %p594_p9 = pnand %p593_p12, %p587_p4 }
  0x67   : > { %518 = vpow2.f32 %v262_v15 }
  0x6e   : > { %v513_v16 = vpop.eup %512 }
  0x6f   : > { %v515_v17 = vpop.eup %514 }
  0x70   : > { %v517_v18 = vpop.eup %516  ;;  %v256_v19 = vadd.f32 %v515_v17, %v513_v16 }
  0x71   : > { %v519_v20 = vpop.eup %518 }
  0x72   : > { %v260_v21 = vadd.f32 %v517_v18, %v256_v19 }
  0x74   : > { %v264_v23 = vadd.f32 %v519_v20, %v260_v21 }
  0x76   : > { %520 = vlog2.f32 %v264_v23 }
  0x80   : > { %v521_v27 = vpop.eup %520 }
  0x81   : > { %v266_v28 = vmul.f32 0.6931472, %v521_v27 }
  0x83   : > { %v267_v30 = vadd.f32 %v266_v28, %v249_v7 }
  0x85   : > { %v280_v31 = vsub.f32 %v278_v29, %v267_v30 }
  0x87   : > { %v281_v32 = vmul.f32 1.442695, %v280_v31 }
  0x89   : > { %522 = vpow2.f32 %v281_v32 }
  0x93   : > { %v523_v36 = vpop.eup %522 }
  0x94   : > { %v283_v37 = vsub.f32 1.0, %v523_v36 }
  0x96   : > { %v284_v39 = vmul.f32 %v283_v37, %v283_v37 }
  0x98   : > { %v285_v40 = vmul.f32 %v284_v39, %v279_v38 }
  0x9a   : > { %v286_v41 = vsub.f32 0.0, %v285_v40 }
  0x9c   : > { %v287_v43 = vmul.f32 %v286_v41, %v280_v31 }
  0x9e   : > { %v289_v44 = vadd.f32 %v288_v42, %v287_v43 }
  0xa0   : > { %290 = vst [vmem:[#allocation2] sm:$0x3] %v289_v44 }
  0xa7   : > { %v294_v45 = vld [vmem:[#allocation2] sm:$0x3] }
  0xa8   : > { %295 = vst [vmem:[%s231_s21] sm:$0x3] %v294_v45 }
  0xa9   : > { %597 = shalt.err (!%p594_p9)
}
  0xaa   : > { %s598_s16 = scalar_lea.hbm %s865_s29, 32  ;;  %s602_s4 = scalar_lea.hbm %s914_s2, 64 }
  0xab   : > { %p599_p1 = scmp.ne.s32.totalorder %s865_s29, %s598_s16  ;;  %p603_p5 = scmp.lt.u32.totalorder %s865_s29, %s914_s2 }
  0xac   : > { %p604_p13 = scmp.lt.u32.totalorder %s602_s4, %s598_s16  ;;  %p606_p8 = scmp.lt.u32.totalorder %s598_s16, %s865_s29 }
  0xad   : > { %p600_p6 = pnand %p599_p1, %p926_p0 }
  0xae   : > { %p605_p3 = por %p604_p13, %p603_p5 }
  0xaf   : > { %p601_p2 = pneg %p600_p6 }
  0xb0   : > { %p607_p11 = por %p606_p8, %p605_p3 }
  0xb2   : > { %p608_p4 = pnand %p607_p11, %p601_p2 }
  0xb4   : > { %611 = shalt.err (!%p608_p4)
}
  0xb5   : > { %446 = dma.vmem_to_hbm [thread:$0]  (%p926_p0), %s860_s26, 32, %s865_s29, %s297_s3  }
  0xb6 PF: > { %s323_s15 = sand.u32 1, %s650_s9   ;;  %p927_p7 = scmp.ne.s32.totalorder %s920_s24, 0 }
  0xb7   : > { %p928_p10 = scmp.ge.s32.totalorder %s670_s14, 2  ;;  %s324_s19 = scalar_lea.sflag [#allocation5], %s323_s15 }
  0xb9   : > { %p456_p12 = pnand %p928_p10, %p927_p7 }
  0xbb   : > { %645 = dma.done.wait (!%p456_p12), %s324_s19, 32  }
  0xbc   : > { %647 = vsyncadd (!%p456_p12), %s324_s19, 4294967264  ;;  %s21_s14 = sadd.s32 1, %s670_s14   ;;  %s929_s9 = smov %s654_s10 }
  0xbd   : > { %p18_p9 = scmp.ge.s32.totalorder %s21_s14, 4   ;;  %s930_s10 = smov %s658_s11 }
  0xbe   : > { %s931_s11 = smov %s749_s23  ;;  %s932_s12 = smov %s666_s13 }
  0xbf   : > { %s933_s13 = smov %s935_s17  ;;  %20 = sbr.rel (!%p18_p9) target bundleno = 8 (0x8), region = 97 }
  0xc6   :  { %329 = vsyncpa [#allocation4], 1 }
  0xc7   :  { %331 = vsyncpa [#allocation4 + $0x1], 1 }
  0xc8   :  { %332 = vsyncpa [#allocation7], 1 }
  0xc9   :  { %334 = vsyncpa [#allocation7 + $0x1], 1 }
  0xca   :  { %335 = vsyncpa [#allocation5], 1 }
  0xcb   :  { %337 = vsyncpa [#allocation5 + $0x1], 1 }

</bundles_post_ra>
